<compile_context>
chip_gen: v5e
topology: v5e:2x2
jax: 0.10.0
libtpu: 0.0.40
codegen_flags: <defaults>
</compile_context>

<pallas_src>
import functools

import jax
import jax.numpy as jnp
from jax.experimental import pallas as pl
from jax.experimental.pallas import tpu as pltpu

LANES = 128
SUB = 8  # f32 sublane count; per-core accumulator tile is (SUB, LANES)


def _rows_align(dtype) -> int:
    # Native sublane tile: 8 rows for 32-bit, 16 for 16-bit, 32 for 8-bit.
    return 8 * max(1, 4 // jnp.dtype(dtype).itemsize)


def _target_tile_rows() -> int:
    try:
        kind = jax.devices()[0].device_kind.lower()
    except Exception:
        kind = ""
    if "v6" in kind or "v7" in kind or "7x" in kind:
        # 4 MiB f32 / input block; 2 inputs x 2 buffers = 16 MiB < 32 MiB scoped default.
        return 8192
    # 2 MiB / input block; 8 MiB double-buffered fits v5e's 16 MiB scoped default.
    return 4096


def _num_tensorcores() -> int:
    # v7x has 2 TensorCores per chip; v5e/v6e have 1.
    # TODO(synk): read this from pltpu.get_tpu_info() once a per-chip
    # TensorCore-count field is exposed there.
    try:
        kind = jax.devices()[0].device_kind.lower()
    except Exception:
        kind = ""
    return 2 if ("v7" in kind or "7x" in kind) else 1


def _mrae_kernel(pred_ref, lab_ref, acc_ref, *, tile_rows, rows_total,
                 steps_per_core, need_mask):
    i = pl.program_id(1)

    @pl.when(i == 0)
    def _():
        acc_ref[...] = jnp.zeros_like(acc_ref)

    p = pred_ref[...].astype(jnp.float32)
    l = lab_ref[...].astype(jnp.float32)
    # Exact divide (accuracy budget rtol=1e-5).  If a v7x bundle/profile shows
    # the divide sequence binding, replace with
    #   r = pl.reciprocal(l, approx=True); r = r * (2.0 - l * r); err = |p-l| * r
    err = jnp.abs(p - l) / l

    def accumulate(e):
        # (tile_rows,128) -> (tile_rows//8, 8, 128) is layout-preserving; the
        # axis-0 sum is plain vreg adds (VPU only, no per-step cross-lane reduce).
        acc_ref[...] += e.reshape(tile_rows // SUB, SUB, LANES).sum(axis=0)

    if need_mask:
        blk = pl.program_id(0) * steps_per_core + i   # logical (unclamped) block
        rows_left = rows_total - blk * tile_rows

        @pl.when(rows_left >= tile_rows)              # full block: no mask cost
        def _():
            accumulate(err)

        @pl.when(rows_left < tile_rows)               # ragged tail / overshoot only
        def _():
            # Loop-invariant iota compared against the per-block row budget.
            row_ids = jax.lax.broadcasted_iota(jnp.int32, (tile_rows, 1), 0)
            # Select (NOT multiply) so NaN/Inf from garbage OOB data is discarded.
            accumulate(jnp.where(row_ids < rows_left, err, 0.0))
    else:
        accumulate(err)


def loss_mrae(outputs, label):
    assert outputs.shape == label.shape
    n = int(outputs.size)

    pred = outputs.reshape(-1)
    lab = label.reshape(-1)

    align = max(_rows_align(outputs.dtype), _rows_align(label.dtype))
    unit = align * LANES                       # 1024 elems (f32), 2048 (bf16), ...
    n_main = (n // unit) * unit                # kernel prefix; tiny tail in plain JAX

    tail_sum = jnp.zeros((), jnp.float32)
    if n_main < n:
        # Tail is < `unit` elements: negligible.  NOTE: only in this unaligned
        # case does the prefix slice below materialize a copy; in the common
        # aligned case the slice is an identity and the reshape a free bitcast,
        # so the kernel streams the original buffers with no extra HBM traffic.
        tp = pred[n_main:].astype(jnp.float32)
        tl = lab[n_main:].astype(jnp.float32)
        tail_sum = jnp.sum(jnp.abs(tp - tl) / tl)

    if n_main == 0:                            # tensor smaller than one tile row-group
        return tail_sum / n

    rows = n_main // LANES                     # multiple of `align` (>= 8)
    pred2d = pred[:n_main].reshape(rows, LANES)
    lab2d = lab[:n_main].reshape(rows, LANES)

    tile_rows = min(_target_tile_rows(), rows)
    num_blocks = -(-rows // tile_rows)
    ncores = min(_num_tensorcores(), num_blocks)
    steps_per_core = -(-num_blocks // ncores)
    overshoot = ncores * steps_per_core != num_blocks
    need_mask = overshoot or (rows % tile_rows != 0)

    def in_index(c, i):
        blk = c * steps_per_core + i
        if overshoot:
            # Clamp the physical fetch; the in-kernel mask (driven by the
            # unclamped logical index) zeroes the duplicated block's contribution.
            blk = jnp.minimum(blk, num_blocks - 1)
        return (blk, 0)

    kernel = functools.partial(
        _mrae_kernel, tile_rows=tile_rows, rows_total=rows,
        steps_per_core=steps_per_core, need_mask=need_mask)

    in_bytes = n_main * (jnp.dtype(outputs.dtype).itemsize
                         + jnp.dtype(label.dtype).itemsize)
    cost = pl.CostEstimate(flops=4 * n_main, transcendentals=n_main,
                           bytes_accessed=in_bytes + ncores * SUB * LANES * 4)

    lead_sem = pltpu.CORE_PARALLEL if ncores > 1 else pltpu.PARALLEL

    partials = pl.pallas_call(
        kernel,
        out_shape=jax.ShapeDtypeStruct((ncores * SUB, LANES), jnp.float32),
        grid_spec=pltpu.PrefetchScalarGridSpec(
            num_scalar_prefetch=0,
            grid=(ncores, steps_per_core),
            in_specs=[
                pl.BlockSpec((tile_rows, LANES), in_index),
                pl.BlockSpec((tile_rows, LANES), in_index),
            ],
            out_specs=pl.BlockSpec((SUB, LANES), lambda c, i: (c, 0)),
        ),
        compiler_params=pltpu.CompilerParams(
            dimension_semantics=(lead_sem, pltpu.ARBITRARY)),
        cost_estimate=cost,
    )(pred2d, lab2d)

    # Tiny final reduction (ncores x 8 x 128 f32) + mean scale in the wrapper.
    return (jnp.sum(partials) + tail_sum) / n


if __name__ == "__main__":
    key = jax.random.PRNGKey(0)
    k1, k2 = jax.random.split(key)
    # NCHW, small shapes: batch=2, channels=4, spatial=16
    shape = (2, 4, 16, 16)
    outputs = jax.random.uniform(k1, shape, jnp.float32, minval=0.1, maxval=1.0)
    label = jax.random.uniform(k2, shape, jnp.float32, minval=0.1, maxval=1.0)

    mrae = loss_mrae(outputs, label)
    jax.block_until_ready(mrae)

    # Reference check in plain JAX
    ref = jnp.mean(jnp.abs(outputs - label) / label)
    assert jnp.allclose(mrae, ref, rtol=1e-5, atol=1e-6), (mrae, ref)

    print("KERNEL_OK")
</pallas_src>

<mosaic_0001>
module attributes {stable_mosaic.version = 11 : i64} {
  func.func @_mrae_kernel(%arg0: i32, %arg1: i32, %arg2: memref<16x128xf32, #tpu.memory_space<vmem>>, %arg3: memref<16x128xf32, #tpu.memory_space<vmem>>, %arg4: memref<8x128xf32, #tpu.memory_space<vmem>>) attributes {dimension_semantics = [#tpu.dimension_semantics<parallel>, #tpu.dimension_semantics<arbitrary>], iteration_bounds = array<i64: 1, 1>, scalar_prefetch = 0 : i64, scratch_operands = 0 : i64, tpu.core_type = #tpu.core_type<tc>, window_params = [{transform_indices = @transform_0, window_bounds = array<i64: 16, 128>}, {transform_indices = @transform_1, window_bounds = array<i64: 16, 128>}, {transform_indices = @transform_2, window_bounds = array<i64: 8, 128>}]} {
    %c0_i32 = arith.constant 0 : i32
    %0 = arith.cmpi eq, %arg1, %c0_i32 : i32
    %1 = arith.extui %0 : i1 to i32
    %c0_i32_0 = arith.constant 0 : i32
    %2 = arith.cmpi ne, %1, %c0_i32_0 : i32
    scf.if %2 {
      %cst_8 = arith.constant 0.000000e+00 : f32
      %13 = vector.broadcast %cst_8 : f32 to vector<8x128xf32>
      %c0_9 = arith.constant 0 : index
      %c0_10 = arith.constant 0 : index
      %14 = vector.load %arg4[%c0_9, %c0_10] : memref<8x128xf32, #tpu.memory_space<vmem>>, vector<8x128xf32>
      tpu.vector_store %arg4[%c0_9, %c0_10], %13 {strides = array<i32>} : memref<8x128xf32, #tpu.memory_space<vmem>>, vector<8x128xf32>,
    } else {
    }
    %c0 = arith.constant 0 : index
    %c0_1 = arith.constant 0 : index
    %3 = vector.load %arg2[%c0, %c0_1] : memref<16x128xf32, #tpu.memory_space<vmem>>, vector<16x128xf32>
    %c0_2 = arith.constant 0 : index
    %c0_3 = arith.constant 0 : index
    %4 = vector.load %arg3[%c0_2, %c0_3] : memref<16x128xf32, #tpu.memory_space<vmem>>, vector<16x128xf32>
    %5 = arith.subf %3, %4 : vector<16x128xf32>
    %6 = math.absf %5 : vector<16x128xf32>
    %7 = arith.divf %6, %4 : vector<16x128xf32>
    %c0_4 = arith.constant 0 : index
    %c0_5 = arith.constant 0 : index
    %8 = vector.load %arg4[%c0_4, %c0_5] : memref<8x128xf32, #tpu.memory_space<vmem>>, vector<8x128xf32>
    %9 = vector.shape_cast %7 : vector<16x128xf32> to vector<2x8x128xf32>
    %cst = arith.constant dense<0.000000e+00> : vector<8x128xf32>
    %10 = vector.multi_reduction <add>, %9, %cst [0] : vector<2x8x128xf32> to vector<8x128xf32>
    %11 = arith.addf %8, %10 : vector<8x128xf32>
    %c0_6 = arith.constant 0 : index
    %c0_7 = arith.constant 0 : index
    %12 = vector.load %arg4[%c0_6, %c0_7] : memref<8x128xf32, #tpu.memory_space<vmem>>, vector<8x128xf32>
    tpu.vector_store %arg4[%c0_6, %c0_7], %11 {strides = array<i32>} : memref<8x128xf32, #tpu.memory_space<vmem>>, vector<8x128xf32>,
    return
  }
  func.func @transform_0(%arg0: i32, %arg1: i32) -> (i32, i32) {
    %c1_i32 = arith.constant 1 : i32
    %0 = arith.muli %arg0, %c1_i32 : i32
    %1 = arith.addi %0, %arg1 : i32
    %c0_i32 = arith.constant 0 : i32
    %c0_i32_0 = arith.constant 0 : i32
    return %1, %c0_i32 : i32, i32
  }
  func.func @transform_1(%arg0: i32, %arg1: i32) -> (i32, i32) {
    %c1_i32 = arith.constant 1 : i32
    %0 = arith.muli %arg0, %c1_i32 : i32
    %1 = arith.addi %0, %arg1 : i32
    %c0_i32 = arith.constant 0 : i32
    %c0_i32_0 = arith.constant 0 : i32
    return %1, %c0_i32 : i32, i32
  }
  func.func @transform_2(%arg0: i32, %arg1: i32) -> (i32, i32) {
    %c0_i32 = arith.constant 0 : i32
    %c0_i32_0 = arith.constant 0 : i32
    return %arg0, %c0_i32 : i32, i32
  }
}

</mosaic_0001>

<bundles_post_ra>
// kernel: tpu_custom_call.1
= control target key start
LH: loop header
LB: loop body
LE: loop exit
PB: predicated region body
PF: predicated region fallthrough
CT: control target
= control target key end

     0   :  { %7 = vsyncpa [#allocation3], 0  ;;  %s238_s0 = inlined_call_operand.hbm [shape: f32[16,128], index: 0, kind: input, shape index: {}]   ;;  %s239_s1 = inlined_call_operand.hbm [shape: f32[16,128], index: 1, kind: input, shape index: {}]   ;;  %s240_s2 = inlined_call_operand.hbm [shape: f32[8,128], index: 2, kind: output, shape index: {}]  }
   0x1   :  { %8 = vsyncpa [#allocation6], 0 }
   0x2   :  { %9 = vsyncpa [#allocation4], 0  ;;  %s18_s11 = sshll.u32 %s238_s0, 4  ;;  %s209_s12 = smov [#allocation2]   ;;  %s19_s11 = int_to_ptr.hbm [resolvable:$true] %s18_s11 }
   0x3   :  { %s20_s13 = sshll.u32 %s209_s12, 4  ;;  %s35_s16 = sshll.u32 %s239_s1, 4  ;;  %s21_s13 = int_to_ptr.vmem [resolvable:$true] %s20_s13  ;;  %s36_s16 = int_to_ptr.hbm [resolvable:$true] %s35_s16 }
   0x4   :  { %s210_s17 = smov 128   ;;  %s211_s18 = smov 8  }
   0x5   :  { %26 = dma.hbm_to_vmem [thread:$0]  %s19_s11, 256, %s21_s13, [#allocation3], %s210_s17, %s210_s17, %s211_s18  }
   0x6   :  { %s212_s19 = smov [#allocation5]  }
   0x7   :  { %s37_s20 = sshll.u32 %s212_s19, 4  ;;  %s38_s20 = int_to_ptr.vmem [resolvable:$true] %s37_s20 }
   0x8   :  { %43 = dma.hbm_to_vmem [thread:$0]  %s36_s16, 256, %s38_s20, [#allocation6], %s210_s17, %s210_s17, %s211_s18  }
   0x9   :  { %203 = dma.done.wait [#allocation3], 256  }
   0xa   :  { %204 = vsyncadd [#allocation3], 4294967040 }
   0xb   :  { %205 = dma.done.wait [#allocation6], 256  }
   0xc   :  { %206 = vsyncadd [#allocation6], 4294967040  ;;  %v63_v0 = vld [vmem:[#allocation5] sm:$0xff]  ;;  %v64_v1 = vld [vmem:[#allocation5 + $0x8] sm:$0xff]  ;;  %s213_s0 = smov [#allocation7]   ;;  %s110_s23 = sshll.u32 %s240_s2, 4  ;;  %s111_s23 = int_to_ptr.hbm [resolvable:$true] %s110_s23 }
   0xd   :  { %127 = vrcp.f32 %v63_v0  ;;  %v61_v2 = vld [vmem:[#allocation2] sm:$0xff]  ;;  %v62_v4 = vld [vmem:[#allocation2 + $0x8] sm:$0xff]  ;;  %vm74_vm0 = vweird.f32 %v63_v0  ;;  %v78_v8 = vand.u32 2147483647, %v63_v0  ;;  %v80_v9 = vand.u32 2147483648, %v63_v0  ;;  %s108_s1 = sshll.u32 %s213_s0, 4  ;;  %s109_s1 = int_to_ptr.vmem [resolvable:$true] %s108_s1 }
   0xe   :  { %129 = vrcp.f32 %v64_v1  ;;  %v65_v6 = vsub.f32 %v61_v2, %v63_v0  ;;  %v66_v11 = vsub.f32 %v62_v4, %v64_v1  ;;  %v95_v13 = vand.u32 2147483648, %v64_v1 }
   0xf   :  { %vm89_vm2 = vweird.f32 %v64_v1  ;;  %v93_v15 = vand.u32 2147483647, %v64_v1  ;;  %v81_v17 = vor.u32 1.1754944e-38, %v80_v9  ;;  %vm79_vm5 = vcmp.eq.f32.partialorder %v78_v8, 8.507059e+37 }
  0x10   :  { %v67_v19 = vand.u32 2147483647, %v65_v6  ;;  %v96_v21 = vor.u32 1.1754944e-38, %v95_v13  ;;  %v68_v22 = vand.u32 2147483647, %v66_v11 }
  0x11   :  { %vm94_vm7 = vcmp.eq.f32.partialorder %v93_v15, 8.507059e+37 }
  0x13   :  { %v128_v3 = vpop.eup %127 }
  0x14   :  { %v130_v5 = vpop.eup %129  ;;  %v70_v7 = vmul.f32 %v128_v3, %v63_v0  ;;  %vm75_vm1 = vweird.f32 %v128_v3 }
  0x15   :  { %v85_v10 = vmul.f32 %v130_v5, %v64_v1  ;;  %vm90_vm3 = vweird.f32 %v130_v5  ;;  %vm76_vm4 = vmor %vm74_vm0, %vm75_vm1 }
  0x16   :  { %v71_v12 = vsub.f32 1.0, %v70_v7  ;;  %vm91_vm6 = vmor %vm89_vm2, %vm90_vm3 }
  0x17   :  { %v86_v14 = vsub.f32 1.0, %v85_v10 }
  0x18   :  { %v72_v16 = vmul.f32 %v128_v3, %v71_v12 }
  0x19   :  { %v87_v18 = vmul.f32 %v130_v5, %v86_v14 }
  0x1a   :  { %v73_v20 = vadd.f32 %v128_v3, %v72_v16 }
  0x1b   :  { %v88_v23 = vadd.f32 %v130_v5, %v87_v18 }
  0x1c   :  { %v77_v24 = vsel %vm76_vm4, %v128_v3, %v73_v20 }
  0x1d   :  { %v82_v25 = vsel %vm79_vm5, %v81_v17, %v77_v24  ;;  %v92_v26 = vsel %vm91_vm6, %v130_v5, %v88_v23 }
  0x1e   :  { %v83_v27 = vmul.f32 %v82_v25, %v67_v19  ;;  %v97_v28 = vsel %vm94_vm7, %v96_v21, %v92_v26 }
  0x1f   :  { %v98_v29 = vmul.f32 %v97_v28, %v68_v22 }
  0x21   :  { %v100_v30 = vadd.f32 %v98_v29, %v83_v27 }
  0x23   :  { %102 = vst [vmem:[#allocation7] sm:$0xff] %v100_v30 }
  0x24   :  { %113 = dma.vmem_to_hbm [thread:$0]  %s109_s1, 128, %s111_s23, [#allocation4]  }
  0x25   :  { %207 = dma.done.wait [#allocation4], 128  }
  0x26   :  { %208 = vsyncadd [#allocation4], 4294967168 }
  0x27   :  { %118 = vsyncpa [#allocation3], 1 }
  0x28   :  { %119 = vsyncpa [#allocation6], 1 }
  0x29   :  { %120 = vsyncpa [#allocation4], 1 }

</bundles_post_ra>
